<compile_context>
chip_gen: v6e
topology: v6e:2x2x1
jax: 0.10.0
libtpu: 0.0.40
codegen_flags: <defaults>
</compile_context>

<pallas_src>
import jax
import jax.numpy as jnp
from jax.experimental import pallas as pl
from jax.experimental.pallas import tpu as pltpu

LANES = 128                 # TPU vreg lane width
DEFAULT_TILE_ROWS = 512     # 512 x 128 f32 = 256 KiB per operand block


def symbolic17_kernel(p_ref, x3_ref, x4_ref, o_ref):
    # p_ref : SMEM (6,) float32 scalars
    # x3_ref: VMEM (tile_rows, 128) float32  -> x[:, 3] reshaped
    # x4_ref: VMEM (tile_rows, 128) float32  -> x[:, 4] reshaped
    # o_ref : VMEM (tile_rows, 128) float32  (lane-dense output)
    p0 = p_ref[0]
    p1 = p_ref[1]
    a = p_ref[2] * p_ref[4]     # p2 * p4 hoisted to the scalar unit
    b = p_ref[3] * p_ref[4]     # p3 * p4 hoisted to the scalar unit
    p5 = p_ref[5]

    x3 = x3_ref[...]
    x4 = x4_ref[...]

    num = x3 * p0 + x4 * p1
    den = x4 * (x3 * a + x4 * b) + p5
    o_ref[...] = num / den


def symbolic17_forward(x, p, tile_rows=DEFAULT_TILE_ROWS):
    """x: (B, F) float32 with F >= 5; p: (6,) float32. Returns (B,) float32."""
    B = x.shape[0]

    # Feed only the two columns the formula uses.
    x3 = x[:, 3].astype(jnp.float32)
    x4 = x[:, 4].astype(jnp.float32)

    # Pad the batch to a multiple of 128 lanes (and of the row tile) and lay
    # it out as (rows, 128) so B sits on the lane axis.
    rows = pl.cdiv(B, LANES)
    if rows <= tile_rows:
        tr = rows                       # single block, full extent on axis 0
        rows_pad = rows
    else:
        tr = tile_rows                  # multiple of 8 -> legal block shape
        rows_pad = pl.cdiv(rows, tr) * tr
    b_pad = rows_pad * LANES
    if b_pad != B:
        pad = b_pad - B
        x3 = jnp.pad(x3, (0, pad))      # zero padding keeps den = p5 (finite)
        x4 = jnp.pad(x4, (0, pad))
    x3_2d = x3.reshape(rows_pad, LANES)
    x4_2d = x4.reshape(rows_pad, LANES)

    grid = (rows_pad // tr,)
    out = pl.pallas_call(
        symbolic17_kernel,
        out_shape=jax.ShapeDtypeStruct((rows_pad, LANES), jnp.float32),
        grid=grid,
        in_specs=[
            pl.BlockSpec(memory_space=pltpu.SMEM),            # parameters
            pl.BlockSpec((tr, LANES), lambda i: (i, 0)),       # x3 block
            pl.BlockSpec((tr, LANES), lambda i: (i, 0)),       # x4 block
        ],
        out_specs=pl.BlockSpec((tr, LANES), lambda i: (i, 0)),
        compiler_params=pltpu.CompilerParams(
            dimension_semantics=("parallel",),                 # megacore shard
        ),
    )(p, x3_2d, x4_2d)

    return out.reshape(b_pad)[:B]


def symbolic17_ref(x, p):
    # Pure-JAX reference mirroring the PyTorch forward exactly.
    return (x[:, 3] * p[0] + p[1] * x[:, 4]) / (
        x[:, 4] * (x[:, 3] * p[2] + p[3] * x[:, 4]) * p[4] + p[5]
    )


if __name__ == "__main__":
    # Deterministic parameters straight from the module's __init__.
    p = jnp.array(
        [2.5899072, 1.0, 4.591682, 1.0, -0.1480232, -2.0037756],
        dtype=jnp.float32,
    )

    key = jax.random.PRNGKey(0)
    k1, k2 = jax.random.split(key)

    # Cartpole-swingup observation: 5 state features; small batch.
    B, F = 8, 5
    x = jax.random.uniform(k1, (B, F), dtype=jnp.float32, minval=-1.0, maxval=1.0)
    out = jax.block_until_ready(symbolic17_forward(x, p))
    ref = symbolic17_ref(x, p)
    assert out.shape == (B,)
    assert jnp.allclose(out, ref, rtol=1e-5, atol=1e-6), (out, ref)

    # Larger batch with a small row tile to exercise the multi-step grid and
    # the lane/row padding path.
    B2 = 3000
    x2 = jax.random.uniform(k2, (B2, F), dtype=jnp.float32, minval=-1.0, maxval=1.0)
    out2 = jax.block_until_ready(symbolic17_forward(x2, p, tile_rows=8))
    ref2 = symbolic17_ref(x2, p)
    assert out2.shape == (B2,)
    assert jnp.allclose(out2, ref2, rtol=1e-5, atol=1e-6), (out2, ref2)

    print("KERNEL_OK")
</pallas_src>

<mosaic_0001>
module attributes {stable_mosaic.version = 11 : i64} {
  func.func @symbolic17_kernel(%arg0: i32, %arg1: memref<6xf32, #tpu.memory_space<smem>>, %arg2: memref<1x128xf32, #tpu.memory_space<vmem>>, %arg3: memref<1x128xf32, #tpu.memory_space<vmem>>, %arg4: memref<1x128xf32, #tpu.memory_space<vmem>>) attributes {dimension_semantics = [#tpu.dimension_semantics<parallel>], iteration_bounds = array<i64: 1>, scalar_prefetch = 0 : i64, scratch_operands = 0 : i64, tpu.core_type = #tpu.core_type<tc>, window_params = [{transform_indices = @transform_0, window_bounds = array<i64: 6>}, {transform_indices = @transform_1, window_bounds = array<i64: 1, 128>}, {transform_indices = @transform_2, window_bounds = array<i64: 1, 128>}, {transform_indices = @transform_3, window_bounds = array<i64: 1, 128>}]} {
    %c0 = arith.constant 0 : index
    %0 = memref.load %arg1[%c0] : memref<6xf32, #tpu.memory_space<smem>>
    %c1 = arith.constant 1 : index
    %1 = memref.load %arg1[%c1] : memref<6xf32, #tpu.memory_space<smem>>
    %c2 = arith.constant 2 : index
    %2 = memref.load %arg1[%c2] : memref<6xf32, #tpu.memory_space<smem>>
    %c4 = arith.constant 4 : index
    %3 = memref.load %arg1[%c4] : memref<6xf32, #tpu.memory_space<smem>>
    %4 = arith.mulf %2, %3 : f32
    %c3 = arith.constant 3 : index
    %5 = memref.load %arg1[%c3] : memref<6xf32, #tpu.memory_space<smem>>
    %c4_0 = arith.constant 4 : index
    %6 = memref.load %arg1[%c4_0] : memref<6xf32, #tpu.memory_space<smem>>
    %7 = arith.mulf %5, %6 : f32
    %c5 = arith.constant 5 : index
    %8 = memref.load %arg1[%c5] : memref<6xf32, #tpu.memory_space<smem>>
    %c0_1 = arith.constant 0 : index
    %c0_2 = arith.constant 0 : index
    %9 = vector.load %arg2[%c0_1, %c0_2] : memref<1x128xf32, #tpu.memory_space<vmem>>, vector<1x128xf32>
    %c0_3 = arith.constant 0 : index
    %c0_4 = arith.constant 0 : index
    %10 = vector.load %arg3[%c0_3, %c0_4] : memref<1x128xf32, #tpu.memory_space<vmem>>, vector<1x128xf32>
    %11 = vector.broadcast %0 : f32 to vector<1x128xf32>
    %12 = arith.mulf %9, %11 : vector<1x128xf32>
    %13 = vector.broadcast %1 : f32 to vector<1x128xf32>
    %14 = arith.mulf %10, %13 : vector<1x128xf32>
    %15 = arith.addf %12, %14 : vector<1x128xf32>
    %16 = vector.broadcast %4 : f32 to vector<1x128xf32>
    %17 = arith.mulf %9, %16 : vector<1x128xf32>
    %18 = vector.broadcast %7 : f32 to vector<1x128xf32>
    %19 = arith.mulf %10, %18 : vector<1x128xf32>
    %20 = arith.addf %17, %19 : vector<1x128xf32>
    %21 = arith.mulf %10, %20 : vector<1x128xf32>
    %22 = vector.broadcast %8 : f32 to vector<1x128xf32>
    %23 = arith.addf %21, %22 : vector<1x128xf32>
    %24 = arith.divf %15, %23 : vector<1x128xf32>
    %c0_5 = arith.constant 0 : index
    %c0_6 = arith.constant 0 : index
    %25 = vector.load %arg4[%c0_5, %c0_6] : memref<1x128xf32, #tpu.memory_space<vmem>>, vector<1x128xf32>
    tpu.vector_store %arg4[%c0_5, %c0_6], %24 {strides = array<i32>} : memref<1x128xf32, #tpu.memory_space<vmem>>, vector<1x128xf32>,
    return
  }
  func.func @transform_0(%arg0: i32) -> i32 {
    %c0_i32 = arith.constant 0 : i32
    %c0_i32_0 = arith.constant 0 : i32
    return %c0_i32 : i32
  }
  func.func @transform_1(%arg0: i32) -> (i32, i32) {
    %c0_i32 = arith.constant 0 : i32
    %c0_i32_0 = arith.constant 0 : i32
    return %arg0, %c0_i32 : i32, i32
  }
  func.func @transform_2(%arg0: i32) -> (i32, i32) {
    %c0_i32 = arith.constant 0 : i32
    %c0_i32_0 = arith.constant 0 : i32
    return %arg0, %c0_i32 : i32, i32
  }
  func.func @transform_3(%arg0: i32) -> (i32, i32) {
    %c0_i32 = arith.constant 0 : i32
    %c0_i32_0 = arith.constant 0 : i32
    return %arg0, %c0_i32 : i32, i32
  }
}

</mosaic_0001>

<bundles_post_ra>
// kernel: tpu_custom_call.1
= control target key start
LH: loop header
LB: loop body
LE: loop exit
PB: predicated region body
PF: predicated region fallthrough
CT: control target
= control target key end

     0   :  { %8 = vsyncpa [#allocation4], 0  ;;  %s142_s0 = inlined_call_operand.hbm [shape: f32[6], index: 0, kind: input, shape index: {}]   ;;  %s143_s1 = inlined_call_operand.vmem [shape: f32[1,128], index: 1, kind: input, shape index: {}]   ;;  %s144_s2 = inlined_call_operand.vmem [shape: f32[1,128], index: 2, kind: input, shape index: {}]   ;;  %s145_s3 = inlined_call_operand.hbm [shape: f32[1,128], index: 3, kind: output, shape index: {}]  }
   0x1   :  { %9 = vsyncpa [#allocation3], 0  ;;  %s108_s12 = smov [#allocation2]  }
   0x2   :  { %17 = dma.hbm_to_smem %s142_s0, 16, %s108_s12, [#allocation4]  }
   0x3   :  { %104 = dma.done.wait [#allocation4], 16  }
   0x4   :  { %105 = vsyncadd [#allocation4], 4294967280 }
   0x5   :  { %25 = sfence }
   0x6   :  { %s68_s15 = sld [smem:[#allocation2 + $0x2]]  ;;  %v34_v0 = vld [vmem:[%s143_s1] sm:$0x1]  ;;  %s109_s1 = smov [#allocation5]  }
   0x7   :  { %s69_s16 = sld [smem:[#allocation2 + $0x4]]  ;;  %v35_v1 = vld [vmem:[%s144_s2] sm:$0x1]  ;;  %s58_s26 = sshll.u32 %s109_s1, 4  ;;  %s59_s26 = int_to_ptr.vmem [resolvable:$true] %s58_s26 }
   0x8   :  { %s70_s17 = sld [smem:[#allocation2 + $0x3]]  ;;  %s84_s2 = scalar_lea.vmem %s59_s26, 16 }
   0x9   :  { %s71_s18 = sld [smem:[#allocation2 + $0x5]]  ;;  %p85_p0 = scmp.ne.s32.totalorder %s59_s26, %s84_s2 }
   0xa   :  { %s26_s0 = sld [smem:[#allocation2]]  ;;  %s88_s27 = scalar_lea.vmem %s59_s26, 32 }
   0xb   :  { %s67_s25 = sld [smem:[#allocation2 + $0x1]]  ;;  %p89_p1 = scmp.lt.s32.totalorder %s59_s26, %s59_s26 }
   0xc   :  { %p90_p2 = scmp.lt.s32.totalorder %s88_s27, %s84_s2 }
   0xd   :  { %s30_s19 = smul.f32 %s69_s16, %s68_s15 }
   0xe   :  { %s32_s22 = smul.f32 %s70_s17, %s69_s16  ;;  %p91_p3 = por %p90_p2, %p89_p1 }
   0xf   :  { %v41_v2 = vstv %s30_s19  ;;  %v47_v7 = vstv %s71_s18 }
  0x10   :  { %v42_v3 = vmul.f32 %v41_v2, %v34_v0  ;;  %v43_v4 = vstv %s32_s22  ;;  %v36_v10 = vstv %s26_s0  ;;  %p92_p4 = pnand %p91_p3, %p85_p0 }
  0x11   :  { %v44_v5 = vmul.f32 %v43_v4, %v35_v1  ;;  %v38_v11 = vstv %s67_s25  ;;  %v37_v12 = vmul.f32 %v36_v10, %v34_v0 }
  0x12   :  { %v39_v13 = vmul.f32 %v38_v11, %v35_v1 }
  0x13   :  { %v45_v6 = vadd.f32 %v44_v5, %v42_v3 }
  0x14   :  { %v40_v14 = vadd.f32 %v39_v13, %v37_v12 }
  0x15   :  { %v46_v8 = vmul.f32 %v45_v6, %v35_v1 }
  0x17   :  { %v48_v9 = vadd.f32 %v47_v7, %v46_v8 }
  0x19   :  { %74 = vrcp.f32 %v48_v9 }
  0x26   :  { %v75_v15 = vpop.eup %74 }
  0x27   :  { %v50_v16 = vmul.f32 %v75_v15, %v40_v14 }
  0x29   :  { %51 = vst [vmem:[#allocation5] sm:$0x1] %v50_v16 }
  0x2a   :  { %95 = shalt.err (!%p92_p4)
}
  0x2b   :  { %61 = dma.vmem_to_hbm [thread:$0]  %s59_s26, 16, %s145_s3, [#allocation3]  }
  0x2c   :  { %106 = dma.done.wait [#allocation3], 16  }
  0x2d   :  { %107 = vsyncadd [#allocation3], 4294967280 }
  0x2e   :  { %65 = vsyncpa [#allocation3], 1 }
  0x2f   :  { %66 = vsyncpa [#allocation4], 1 }

</bundles_post_ra>
